<compile_context>
chip_gen: v5e
topology: v5e:2x2
jax: 0.10.0
libtpu: 0.0.40
codegen_flags: <defaults>
</compile_context>

<pallas_src>
import functools

import jax
import jax.numpy as jnp
from jax.experimental import pallas as pl
from jax.experimental.pallas import tpu as pltpu

IN_FEATURES = 7
HIDDEN_LAYERS = 10
HIDDEN_NODES = 85
OUT_FEATURES = 5

PAD = 128          # lane-aligned hidden width
IN_PAD = 8         # 7 -> 8  (sublane-aligned K for layer 0)
OUT_PAD = 8        # 5 -> 8  (narrow lane-masked output)
NUM_LAYERS = HIDDEN_LAYERS + 1
DEFAULT_MAX_TILE_B = 2048   # keeps pipelined VMEM well under v5e's 16 MiB scope


def _cdiv(a, b):
    return -(-a // b)


def _round_up(x, m):
    return _cdiv(x, m) * m


def _choose_tiling(batch, max_tile):
    """(tile_b, padded_batch): sublane-aligned, tail-tight, and >=2 even grid
    steps when the batch allows it (v7x megacore gets both TCs busy)."""
    b8 = _round_up(max(batch, 1), 8)
    n_steps = max(2 if b8 >= 16 else 1, _cdiv(b8, max_tile))
    if n_steps > 1 and n_steps % 2 == 1:
        n_steps += 1
    tile_b = _round_up(_cdiv(b8, n_steps), 8)
    b_pad = _round_up(b8, tile_b)
    return tile_b, b_pad


def mlp_kernel(x_ref, w0_ref, wmid_ref, wlast_ref, bmid_ref, blast_ref, out_ref):
    # x_ref:     (tile_b, 8)    f32   -- x padded 7 -> 8
    # w0_ref:    (8, 128)       bf16  -- layer 0 weight, zero-padded
    # wmid_ref:  (9, 128, 128)  bf16  -- layers 1..9, zero-padded
    # wlast_ref: (128, 8)       bf16  -- output-layer weight, zero-padded
    # bmid_ref:  (10, 128)      f32   -- biases of layers 0..9
    # blast_ref: (1, 8)         f32   -- output-layer bias
    # out_ref:   (tile_b, 8)    f32   -- cols 5..7 are zero / don't-care
    h = jnp.dot(x_ref[...].astype(jnp.bfloat16), w0_ref[...],
                preferred_element_type=jnp.float32)
    h = jnp.maximum(h + bmid_ref[0][None, :], 0.0)
    # Statically unrolled hidden chain: every weight/bias index is static,
    # giving back-to-back 128x128 bf16 MXU passes with f32 accumulation.
    for i in range(HIDDEN_LAYERS - 1):
        y = jnp.dot(h.astype(jnp.bfloat16), wmid_ref[i],
                    preferred_element_type=jnp.float32)
        h = jnp.maximum(y + bmid_ref[i + 1][None, :], 0.0)
    out_ref[...] = (
        jnp.dot(h.astype(jnp.bfloat16), wlast_ref[...],
                preferred_element_type=jnp.float32)
        + blast_ref[...]
    )


@functools.partial(jax.jit, static_argnames=("max_tile_b",))
def mlp_forward(x, w0, wmid, wlast, bmid, blast, *, max_tile_b=DEFAULT_MAX_TILE_B):
    """x: (B, 7) float32 -> (B, 5) float32."""
    batch = x.shape[0]
    tile_b, b_pad = _choose_tiling(batch, max_tile_b)

    # Cheap narrow pad: batch -> multiple of tile_b, features 7 -> 8.
    x_pad = jnp.zeros((b_pad, IN_PAD), jnp.float32).at[:batch, :IN_FEATURES].set(x)

    grid = (b_pad // tile_b,)
    const2 = lambda i: (0, 0)
    const3 = lambda i: (0, 0, 0)
    out = pl.pallas_call(
        mlp_kernel,
        out_shape=jax.ShapeDtypeStruct((b_pad, OUT_PAD), jnp.float32),
        grid_spec=pltpu.PrefetchScalarGridSpec(
            num_scalar_prefetch=0,
            grid=grid,
            in_specs=[
                pl.BlockSpec((tile_b, IN_PAD), lambda i: (i, 0)),
                pl.BlockSpec((IN_PAD, PAD), const2),
                pl.BlockSpec((HIDDEN_LAYERS - 1, PAD, PAD), const3),
                pl.BlockSpec((PAD, OUT_PAD), const2),
                pl.BlockSpec((HIDDEN_LAYERS, PAD), const2),
                pl.BlockSpec((1, OUT_PAD), const2),
            ],
            out_specs=pl.BlockSpec((tile_b, OUT_PAD), lambda i: (i, 0)),
        ),
        compiler_params=pltpu.CompilerParams(
            dimension_semantics=("parallel",),
        ),
    )(x_pad, w0, wmid, wlast, bmid, blast)

    return out[:batch, :OUT_FEATURES]


def make_params(key):
    """Synthetic nn.Linear-style parameters (unpadded, f32, (in, out) layout)."""
    keys = jax.random.split(key, 2 * NUM_LAYERS)
    dims = [IN_FEATURES] + [HIDDEN_NODES] * HIDDEN_LAYERS + [OUT_FEATURES]
    ws, bs = [], []
    for layer in range(NUM_LAYERS):
        fan_in, fan_out = dims[layer], dims[layer + 1]
        bound = float(fan_in) ** -0.5
        ws.append(jax.random.uniform(keys[2 * layer], (fan_in, fan_out),
                                     jnp.float32, -bound, bound))
        bs.append(jax.random.uniform(keys[2 * layer + 1], (fan_out,),
                                     jnp.float32, -bound, bound))
    return ws, bs


def pack_params(ws, bs):
    """Zero-pad / stack / cast parameters into the kernel's resident layout."""
    w0 = (jnp.zeros((IN_PAD, PAD), jnp.float32)
          .at[:IN_FEATURES, :HIDDEN_NODES].set(ws[0])).astype(jnp.bfloat16)
    wmid = jnp.zeros((HIDDEN_LAYERS - 1, PAD, PAD), jnp.float32)
    for i in range(1, HIDDEN_LAYERS):
        wmid = wmid.at[i - 1, :HIDDEN_NODES, :HIDDEN_NODES].set(ws[i])
    wmid = wmid.astype(jnp.bfloat16)
    wlast = (jnp.zeros((PAD, OUT_PAD), jnp.float32)
             .at[:HIDDEN_NODES, :OUT_FEATURES].set(ws[-1])).astype(jnp.bfloat16)
    bmid = jnp.zeros((HIDDEN_LAYERS, PAD), jnp.float32)
    for i in range(HIDDEN_LAYERS):
        bmid = bmid.at[i, :HIDDEN_NODES].set(bs[i])
    blast = (jnp.zeros((1, OUT_PAD), jnp.float32)
             .at[0, :OUT_FEATURES].set(bs[-1]))
    return w0, wmid, wlast, bmid, blast


def reference_forward(x, ws, bs):
    """Pure-JAX f32 reference matching the PyTorch forward."""
    h = x
    for i in range(HIDDEN_LAYERS):
        h = jnp.maximum(h @ ws[i] + bs[i], 0.0)
    return h @ ws[-1] + bs[-1]


if __name__ == "__main__":
    key = jax.random.PRNGKey(0)
    k_params, k_x1, k_x2 = jax.random.split(key, 3)

    ws, bs = make_params(k_params)
    packed = pack_params(ws, bs)

    # Small demo batch.
    x = jax.random.normal(k_x1, (8, IN_FEATURES), jnp.float32)
    out = jax.block_until_ready(mlp_forward(x, *packed))
    ref = reference_forward(x, ws, bs)
    assert out.shape == (8, OUT_FEATURES)
    # bf16 matmuls with f32 accumulation -> loosened tolerance vs f32 reference.
    assert jnp.allclose(out, ref, atol=5e-2, rtol=5e-2), "mismatch vs reference"

    # Batch that is neither a multiple of 8 nor of the tile size (tail path,
    # exercises the >=2-step grid and padded rows).
    x2 = jax.random.normal(k_x2, (37, IN_FEATURES), jnp.float32)
    out2 = jax.block_until_ready(mlp_forward(x2, *packed))
    ref2 = reference_forward(x2, ws, bs)
    assert out2.shape == (37, OUT_FEATURES)
    assert jnp.allclose(out2, ref2, atol=5e-2, rtol=5e-2), "mismatch vs reference (tail)"

    print("KERNEL_OK")
</pallas_src>

<mosaic_0001>
module attributes {stable_mosaic.version = 11 : i64} {
  func.func @mlp_kernel(%arg0: i32, %arg1: memref<8x8xf32, #tpu.memory_space<vmem>>, %arg2: memref<8x128xbf16, #tpu.memory_space<vmem>>, %arg3: memref<9x128x128xbf16, #tpu.memory_space<vmem>>, %arg4: memref<128x8xbf16, #tpu.memory_space<vmem>>, %arg5: memref<10x128xf32, #tpu.memory_space<vmem>>, %arg6: memref<1x8xf32, #tpu.memory_space<vmem>>, %arg7: memref<8x8xf32, #tpu.memory_space<vmem>>) attributes {dimension_semantics = [#tpu.dimension_semantics<parallel>], iteration_bounds = array<i64: 1>, scalar_prefetch = 0 : i64, scratch_operands = 0 : i64, tpu.core_type = #tpu.core_type<tc>, window_params = [{transform_indices = @transform_0, window_bounds = array<i64: 8, 8>}, {pipeline_mode = #tpu.pipeline_mode<synchronous>, transform_indices = @transform_1, window_bounds = array<i64: 8, 128>}, {pipeline_mode = #tpu.pipeline_mode<synchronous>, transform_indices = @transform_2, window_bounds = array<i64: 9, 128, 128>}, {pipeline_mode = #tpu.pipeline_mode<synchronous>, transform_indices = @transform_3, window_bounds = array<i64: 128, 8>}, {pipeline_mode = #tpu.pipeline_mode<synchronous>, transform_indices = @transform_4, window_bounds = array<i64: 10, 128>}, {pipeline_mode = #tpu.pipeline_mode<synchronous>, transform_indices = @transform_5, window_bounds = array<i64: 1, 8>}, {transform_indices = @transform_6, window_bounds = array<i64: 8, 8>}]} {
    %c0 = arith.constant 0 : index
    %c0_0 = arith.constant 0 : index
    %0 = vector.load %arg1[%c0, %c0_0] : memref<8x8xf32, #tpu.memory_space<vmem>>, vector<8x8xf32>
    %1 = arith.truncf %0 : vector<8x8xf32> to vector<8x8xbf16>
    %c0_1 = arith.constant 0 : index
    %c0_2 = arith.constant 0 : index
    %2 = vector.load %arg2[%c0_1, %c0_2] : memref<8x128xbf16, #tpu.memory_space<vmem>>, vector<8x128xbf16>
    %cst = arith.constant dense<0.000000e+00> : vector<8x128xf32>
    %3 = tpu.matmul %1, %2, %cst {dimension_numbers = #tpu.dot_dimension_numbers<[1], [0], [0], [1], [0, 0, 1, 1], [], []>} : vector<8x8xbf16>, vector<8x128xbf16>, vector<8x128xf32> -> vector<8x128xf32>
    %c0_3 = arith.constant 0 : index
    %c0_4 = arith.constant 0 : index
    %4 = vector.load %arg5[%c0_3, %c0_4] : memref<10x128xf32, #tpu.memory_space<vmem>>, vector<1x128xf32>
    %5 = vector.shape_cast %4 : vector<1x128xf32> to vector<128xf32>
    %6 = vector.shape_cast %5 : vector<128xf32> to vector<1x128xf32>
    %7 = vector.broadcast %6 : vector<1x128xf32> to vector<8x128xf32>
    %8 = arith.addf %3, %7 : vector<8x128xf32>
    %cst_5 = arith.constant 0.000000e+00 : f32
    %9 = vector.broadcast %cst_5 : f32 to vector<8x128xf32>
    %10 = arith.maximumf %8, %9 : vector<8x128xf32>
    %11 = arith.truncf %10 : vector<8x128xf32> to vector<8x128xbf16>
    %c0_6 = arith.constant 0 : index
    %c0_7 = arith.constant 0 : index
    %c0_8 = arith.constant 0 : index
    %12 = vector.load %arg3[%c0_6, %c0_7, %c0_8] : memref<9x128x128xbf16, #tpu.memory_space<vmem>>, vector<1x128x128xbf16>
    %13 = vector.shape_cast %12 : vector<1x128x128xbf16> to vector<128x128xbf16>
    %cst_9 = arith.constant dense<0.000000e+00> : vector<8x128xf32>
    %14 = tpu.matmul %11, %13, %cst_9 {dimension_numbers = #tpu.dot_dimension_numbers<[1], [0], [0], [1], [0, 0, 1, 1], [], []>} : vector<8x128xbf16>, vector<128x128xbf16>, vector<8x128xf32> -> vector<8x128xf32>
    %c1 = arith.constant 1 : index
    %c0_10 = arith.constant 0 : index
    %15 = vector.load %arg5[%c1, %c0_10] : memref<10x128xf32, #tpu.memory_space<vmem>>, vector<1x128xf32>
    %16 = vector.shape_cast %15 : vector<1x128xf32> to vector<128xf32>
    %17 = vector.shape_cast %16 : vector<128xf32> to vector<1x128xf32>
    %18 = vector.broadcast %17 : vector<1x128xf32> to vector<8x128xf32>
    %19 = arith.addf %14, %18 : vector<8x128xf32>
    %cst_11 = arith.constant 0.000000e+00 : f32
    %20 = vector.broadcast %cst_11 : f32 to vector<8x128xf32>
    %21 = arith.maximumf %19, %20 : vector<8x128xf32>
    %22 = arith.truncf %21 : vector<8x128xf32> to vector<8x128xbf16>
    %c1_12 = arith.constant 1 : index
    %c0_13 = arith.constant 0 : index
    %c0_14 = arith.constant 0 : index
    %23 = vector.load %arg3[%c1_12, %c0_13, %c0_14] : memref<9x128x128xbf16, #tpu.memory_space<vmem>>, vector<1x128x128xbf16>
    %24 = vector.shape_cast %23 : vector<1x128x128xbf16> to vector<128x128xbf16>
    %cst_15 = arith.constant dense<0.000000e+00> : vector<8x128xf32>
    %25 = tpu.matmul %22, %24, %cst_15 {dimension_numbers = #tpu.dot_dimension_numbers<[1], [0], [0], [1], [0, 0, 1, 1], [], []>} : vector<8x128xbf16>, vector<128x128xbf16>, vector<8x128xf32> -> vector<8x128xf32>
    %c2 = arith.constant 2 : index
    %c0_16 = arith.constant 0 : index
    %26 = vector.load %arg5[%c2, %c0_16] : memref<10x128xf32, #tpu.memory_space<vmem>>, vector<1x128xf32>
    %27 = vector.shape_cast %26 : vector<1x128xf32> to vector<128xf32>
    %28 = vector.shape_cast %27 : vector<128xf32> to vector<1x128xf32>
    %29 = vector.broadcast %28 : vector<1x128xf32> to vector<8x128xf32>
    %30 = arith.addf %25, %29 : vector<8x128xf32>
    %cst_17 = arith.constant 0.000000e+00 : f32
    %31 = vector.broadcast %cst_17 : f32 to vector<8x128xf32>
    %32 = arith.maximumf %30, %31 : vector<8x128xf32>
    %33 = arith.truncf %32 : vector<8x128xf32> to vector<8x128xbf16>
    %c2_18 = arith.constant 2 : index
    %c0_19 = arith.constant 0 : index
    %c0_20 = arith.constant 0 : index
    %34 = vector.load %arg3[%c2_18, %c0_19, %c0_20] : memref<9x128x128xbf16, #tpu.memory_space<vmem>>, vector<1x128x128xbf16>
    %35 = vector.shape_cast %34 : vector<1x128x128xbf16> to vector<128x128xbf16>
    %cst_21 = arith.constant dense<0.000000e+00> : vector<8x128xf32>
    %36 = tpu.matmul %33, %35, %cst_21 {dimension_numbers = #tpu.dot_dimension_numbers<[1], [0], [0], [1], [0, 0, 1, 1], [], []>} : vector<8x128xbf16>, vector<128x128xbf16>, vector<8x128xf32> -> vector<8x128xf32>
    %c3 = arith.constant 3 : index
    %c0_22 = arith.constant 0 : index
    %37 = vector.load %arg5[%c3, %c0_22] : memref<10x128xf32, #tpu.memory_space<vmem>>, vector<1x128xf32>
    %38 = vector.shape_cast %37 : vector<1x128xf32> to vector<128xf32>
    %39 = vector.shape_cast %38 : vector<128xf32> to vector<1x128xf32>
    %40 = vector.broadcast %39 : vector<1x128xf32> to vector<8x128xf32>
    %41 = arith.addf %36, %40 : vector<8x128xf32>
    %cst_23 = arith.constant 0.000000e+00 : f32
    %42 = vector.broadcast %cst_23 : f32 to vector<8x128xf32>
    %43 = arith.maximumf %41, %42 : vector<8x128xf32>
    %44 = arith.truncf %43 : vector<8x128xf32> to vector<8x128xbf16>
    %c3_24 = arith.constant 3 : index
    %c0_25 = arith.constant 0 : index
    %c0_26 = arith.constant 0 : index
    %45 = vector.load %arg3[%c3_24, %c0_25, %c0_26] : memref<9x128x128xbf16, #tpu.memory_space<vmem>>, vector<1x128x128xbf16>
    %46 = vector.shape_cast %45 : vector<1x128x128xbf16> to vector<128x128xbf16>
    %cst_27 = arith.constant dense<0.000000e+00> : vector<8x128xf32>
    %47 = tpu.matmul %44, %46, %cst_27 {dimension_numbers = #tpu.dot_dimension_numbers<[1], [0], [0], [1], [0, 0, 1, 1], [], []>} : vector<8x128xbf16>, vector<128x128xbf16>, vector<8x128xf32> -> vector<8x128xf32>
    %c4 = arith.constant 4 : index
    %c0_28 = arith.constant 0 : index
    %48 = vector.load %arg5[%c4, %c0_28] : memref<10x128xf32, #tpu.memory_space<vmem>>, vector<1x128xf32>
    %49 = vector.shape_cast %48 : vector<1x128xf32> to vector<128xf32>
    %50 = vector.shape_cast %49 : vector<128xf32> to vector<1x128xf32>
    %51 = vector.broadcast %50 : vector<1x128xf32> to vector<8x128xf32>
    %52 = arith.addf %47, %51 : vector<8x128xf32>
    %cst_29 = arith.constant 0.000000e+00 : f32
    %53 = vector.broadcast %cst_29 : f32 to vector<8x128xf32>
    %54 = arith.maximumf %52, %53 : vector<8x128xf32>
    %55 = arith.truncf %54 : vector<8x128xf32> to vector<8x128xbf16>
    %c4_30 = arith.constant 4 : index
    %c0_31 = arith.constant 0 : index
    %c0_32 = arith.constant 0 : index
    %56 = vector.load %arg3[%c4_30, %c0_31, %c0_32] : memref<9x128x128xbf16, #tpu.memory_space<vmem>>, vector<1x128x128xbf16>
    %57 = vector.shape_cast %56 : vector<1x128x128xbf16> to vector<128x128xbf16>
    %cst_33 = arith.constant dense<0.000000e+00> : vector<8x128xf32>
    %58 = tpu.matmul %55, %57, %cst_33 {dimension_numbers = #tpu.dot_dimension_numbers<[1], [0], [0], [1], [0, 0, 1, 1], [], []>} : vector<8x128xbf16>, vector<128x128xbf16>, vector<8x128xf32> -> vector<8x128xf32>
    %c5 = arith.constant 5 : index
    %c0_34 = arith.constant 0 : index
    %59 = vector.load %arg5[%c5, %c0_34] : memref<10x128xf32, #tpu.memory_space<vmem>>, vector<1x128xf32>
    %60 = vector.shape_cast %59 : vector<1x128xf32> to vector<128xf32>
    %61 = vector.shape_cast %60 : vector<128xf32> to vector<1x128xf32>
    %62 = vector.broadcast %61 : vector<1x128xf32> to vector<8x128xf32>
    %63 = arith.addf %58, %62 : vector<8x128xf32>
    %cst_35 = arith.constant 0.000000e+00 : f32
    %64 = vector.broadcast %cst_35 : f32 to vector<8x128xf32>
    %65 = arith.maximumf %63, %64 : vector<8x128xf32>
    %66 = arith.truncf %65 : vector<8x128xf32> to vector<8x128xbf16>
    %c5_36 = arith.constant 5 : index
    %c0_37 = arith.constant 0 : index
    %c0_38 = arith.constant 0 : index
    %67 = vector.load %arg3[%c5_36, %c0_37, %c0_38] : memref<9x128x128xbf16, #tpu.memory_space<vmem>>, vector<1x128x128xbf16>
    %68 = vector.shape_cast %67 : vector<1x128x128xbf16> to vector<128x128xbf16>
    %cst_39 = arith.constant dense<0.000000e+00> : vector<8x128xf32>
    %69 = tpu.matmul %66, %68, %cst_39 {dimension_numbers = #tpu.dot_dimension_numbers<[1], [0], [0], [1], [0, 0, 1, 1], [], []>} : vector<8x128xbf16>, vector<128x128xbf16>, vector<8x128xf32> -> vector<8x128xf32>
    %c6 = arith.constant 6 : index
    %c0_40 = arith.constant 0 : index
    %70 = vector.load %arg5[%c6, %c0_40] : memref<10x128xf32, #tpu.memory_space<vmem>>, vector<1x128xf32>
    %71 = vector.shape_cast %70 : vector<1x128xf32> to vector<128xf32>
    %72 = vector.shape_cast %71 : vector<128xf32> to vector<1x128xf32>
    %73 = vector.broadcast %72 : vector<1x128xf32> to vector<8x128xf32>
    %74 = arith.addf %69, %73 : vector<8x128xf32>
    %cst_41 = arith.constant 0.000000e+00 : f32
    %75 = vector.broadcast %cst_41 : f32 to vector<8x128xf32>
    %76 = arith.maximumf %74, %75 : vector<8x128xf32>
    %77 = arith.truncf %76 : vector<8x128xf32> to vector<8x128xbf16>
    %c6_42 = arith.constant 6 : index
    %c0_43 = arith.constant 0 : index
    %c0_44 = arith.constant 0 : index
    %78 = vector.load %arg3[%c6_42, %c0_43, %c0_44] : memref<9x128x128xbf16, #tpu.memory_space<vmem>>, vector<1x128x128xbf16>
    %79 = vector.shape_cast %78 : vector<1x128x128xbf16> to vector<128x128xbf16>
    %cst_45 = arith.constant dense<0.000000e+00> : vector<8x128xf32>
    %80 = tpu.matmul %77, %79, %cst_45 {dimension_numbers = #tpu.dot_dimension_numbers<[1], [0], [0], [1], [0, 0, 1, 1], [], []>} : vector<8x128xbf16>, vector<128x128xbf16>, vector<8x128xf32> -> vector<8x128xf32>
    %c7 = arith.constant 7 : index
    %c0_46 = arith.constant 0 : index
    %81 = vector.load %arg5[%c7, %c0_46] : memref<10x128xf32, #tpu.memory_space<vmem>>, vector<1x128xf32>
    %82 = vector.shape_cast %81 : vector<1x128xf32> to vector<128xf32>
    %83 = vector.shape_cast %82 : vector<128xf32> to vector<1x128xf32>
    %84 = vector.broadcast %83 : vector<1x128xf32> to vector<8x128xf32>
    %85 = arith.addf %80, %84 : vector<8x128xf32>
    %cst_47 = arith.constant 0.000000e+00 : f32
    %86 = vector.broadcast %cst_47 : f32 to vector<8x128xf32>
    %87 = arith.maximumf %85, %86 : vector<8x128xf32>
    %88 = arith.truncf %87 : vector<8x128xf32> to vector<8x128xbf16>
    %c7_48 = arith.constant 7 : index
    %c0_49 = arith.constant 0 : index
    %c0_50 = arith.constant 0 : index
    %89 = vector.load %arg3[%c7_48, %c0_49, %c0_50] : memref<9x128x128xbf16, #tpu.memory_space<vmem>>, vector<1x128x128xbf16>
    %90 = vector.shape_cast %89 : vector<1x128x128xbf16> to vector<128x128xbf16>
    %cst_51 = arith.constant dense<0.000000e+00> : vector<8x128xf32>
    %91 = tpu.matmul %88, %90, %cst_51 {dimension_numbers = #tpu.dot_dimension_numbers<[1], [0], [0], [1], [0, 0, 1, 1], [], []>} : vector<8x128xbf16>, vector<128x128xbf16>, vector<8x128xf32> -> vector<8x128xf32>
    %c8 = arith.constant 8 : index
    %c0_52 = arith.constant 0 : index
    %92 = vector.load %arg5[%c8, %c0_52] : memref<10x128xf32, #tpu.memory_space<vmem>>, vector<1x128xf32>
    %93 = vector.shape_cast %92 : vector<1x128xf32> to vector<128xf32>
    %94 = vector.shape_cast %93 : vector<128xf32> to vector<1x128xf32>
    %95 = vector.broadcast %94 : vector<1x128xf32> to vector<8x128xf32>
    %96 = arith.addf %91, %95 : vector<8x128xf32>
    %cst_53 = arith.constant 0.000000e+00 : f32
    %97 = vector.broadcast %cst_53 : f32 to vector<8x128xf32>
    %98 = arith.maximumf %96, %97 : vector<8x128xf32>
    %99 = arith.truncf %98 : vector<8x128xf32> to vector<8x128xbf16>
    %c8_54 = arith.constant 8 : index
    %c0_55 = arith.constant 0 : index
    %c0_56 = arith.constant 0 : index
    %100 = vector.load %arg3[%c8_54, %c0_55, %c0_56] : memref<9x128x128xbf16, #tpu.memory_space<vmem>>, vector<1x128x128xbf16>
    %101 = vector.shape_cast %100 : vector<1x128x128xbf16> to vector<128x128xbf16>
    %cst_57 = arith.constant dense<0.000000e+00> : vector<8x128xf32>
    %102 = tpu.matmul %99, %101, %cst_57 {dimension_numbers = #tpu.dot_dimension_numbers<[1], [0], [0], [1], [0, 0, 1, 1], [], []>} : vector<8x128xbf16>, vector<128x128xbf16>, vector<8x128xf32> -> vector<8x128xf32>
    %c9 = arith.constant 9 : index
    %c0_58 = arith.constant 0 : index
    %103 = vector.load %arg5[%c9, %c0_58] : memref<10x128xf32, #tpu.memory_space<vmem>>, vector<1x128xf32>
    %104 = vector.shape_cast %103 : vector<1x128xf32> to vector<128xf32>
    %105 = vector.shape_cast %104 : vector<128xf32> to vector<1x128xf32>
    %106 = vector.broadcast %105 : vector<1x128xf32> to vector<8x128xf32>
    %107 = arith.addf %102, %106 : vector<8x128xf32>
    %cst_59 = arith.constant 0.000000e+00 : f32
    %108 = vector.broadcast %cst_59 : f32 to vector<8x128xf32>
    %109 = arith.maximumf %107, %108 : vector<8x128xf32>
    %110 = arith.truncf %109 : vector<8x128xf32> to vector<8x128xbf16>
    %c0_60 = arith.constant 0 : index
    %c0_61 = arith.constant 0 : index
    %111 = vector.load %arg4[%c0_60, %c0_61] : memref<128x8xbf16, #tpu.memory_space<vmem>>, vector<128x8xbf16>
    %cst_62 = arith.constant dense<0.000000e+00> : vector<8x8xf32>
    %112 = tpu.matmul %110, %111, %cst_62 {dimension_numbers = #tpu.dot_dimension_numbers<[1], [0], [0], [1], [0, 0, 1, 1], [], []>} : vector<8x128xbf16>, vector<128x8xbf16>, vector<8x8xf32> -> vector<8x8xf32>
    %c0_63 = arith.constant 0 : index
    %c0_64 = arith.constant 0 : index
    %113 = vector.load %arg6[%c0_63, %c0_64] : memref<1x8xf32, #tpu.memory_space<vmem>>, vector<1x8xf32>
    %114 = vector.broadcast %113 : vector<1x8xf32> to vector<8x8xf32>
    %115 = arith.addf %112, %114 : vector<8x8xf32>
    %c0_65 = arith.constant 0 : index
    %c0_66 = arith.constant 0 : index
    %116 = vector.load %arg7[%c0_65, %c0_66] : memref<8x8xf32, #tpu.memory_space<vmem>>, vector<8x8xf32>
    tpu.vector_store %arg7[%c0_65, %c0_66], %115 {strides = array<i32>} : memref<8x8xf32, #tpu.memory_space<vmem>>, vector<8x8xf32>,
    return
  }
  func.func @transform_0(%arg0: i32) -> (i32, i32) {
    %c0_i32 = arith.constant 0 : i32
    %c0_i32_0 = arith.constant 0 : i32
    return %arg0, %c0_i32 : i32, i32
  }
  func.func @transform_1(%arg0: i32) -> (i32, i32) {
    %c0_i32 = arith.constant 0 : i32
    %c0_i32_0 = arith.constant 0 : i32
    %c0_i32_1 = arith.constant 0 : i32
    return %c0_i32, %c0_i32_0 : i32, i32
  }
  func.func @transform_2(%arg0: i32) -> (i32, i32, i32) {
    %c0_i32 = arith.constant 0 : i32
    %c0_i32_0 = arith.constant 0 : i32
    %c0_i32_1 = arith.constant 0 : i32
    %c0_i32_2 = arith.constant 0 : i32
    return %c0_i32, %c0_i32_0, %c0_i32_1 : i32, i32, i32
  }
  func.func @transform_3(%arg0: i32) -> (i32, i32) {
    %c0_i32 = arith.constant 0 : i32
    %c0_i32_0 = arith.constant 0 : i32
    %c0_i32_1 = arith.constant 0 : i32
    return %c0_i32, %c0_i32_0 : i32, i32
  }
  func.func @transform_4(%arg0: i32) -> (i32, i32) {
    %c0_i32 = arith.constant 0 : i32
    %c0_i32_0 = arith.constant 0 : i32
    %c0_i32_1 = arith.constant 0 : i32
    return %c0_i32, %c0_i32_0 : i32, i32
  }
  func.func @transform_5(%arg0: i32) -> (i32, i32) {
    %c0_i32 = arith.constant 0 : i32
    %c0_i32_0 = arith.constant 0 : i32
    %c0_i32_1 = arith.constant 0 : i32
    return %c0_i32, %c0_i32_0 : i32, i32
  }
  func.func @transform_6(%arg0: i32) -> (i32, i32) {
    %c0_i32 = arith.constant 0 : i32
    %c0_i32_0 = arith.constant 0 : i32
    return %arg0, %c0_i32 : i32, i32
  }
}

</mosaic_0001>

<bundles_post_ra>
// kernel: mlp_forward.1
= control target key start
LH: loop header
LB: loop body
LE: loop exit
PB: predicated region body
PF: predicated region fallthrough
CT: control target
= control target key end

     0   :  { %11 = vsyncpa [#allocation3], 0  ;;  %s1483_s0 = inlined_call_operand.vmem [shape: f32[8,8], index: 0, kind: input, shape index: {}]   ;;  %s1484_s1 = inlined_call_operand.vmem [shape: bf16[8,128], index: 1, kind: input, shape index: {}]   ;;  %s1485_s2 = inlined_call_operand.hbm [shape: bf16[9,128,128], index: 2, kind: input, shape index: {}]   ;;  %s1486_s3 = inlined_call_operand.vmem [shape: bf16[128,8], index: 3, kind: input, shape index: {}]   ;;  %s1487_s4 = inlined_call_operand.vmem [shape: f32[10,128], index: 4, kind: input, shape index: {}]   ;;  %s1488_s5 = inlined_call_operand.vmem [shape: f32[1,8], index: 5, kind: input, shape index: {}]   ;;  %s1489_s6 = inlined_call_operand.hbm [shape: f32[8,8], index: 6, kind: output, shape index: {}]  }
   0x1   :  { %12 = vsyncpa [#allocation4], 0  ;;  %s21_s23 = sshll.u32 %s1485_s2, 4  ;;  %s1373_s24 = smov [#allocation2]   ;;  %s22_s23 = int_to_ptr.hbm [resolvable:$true] %s21_s23 }
   0x2   :  { %s23_s25 = sshll.u32 %s1373_s24, 4  ;;  %s1374_s26 = smov 64   ;;  %s24_s25 = int_to_ptr.vmem [resolvable:$true] %s23_s25 }
   0x3   :  { %s1375_s27 = smov 4  }
   0x4   :  { %29 = dma.hbm_to_vmem [thread:$0]  %s22_s23, 9216, %s24_s25, [#allocation3], %s1374_s26, %s1374_s26, %s1375_s27  }
   0x5   :  { %1369 = dma.done.wait [#allocation3], 9216  }
   0x6   :  { %1370 = vsyncadd [#allocation3], 4294958080  ;;  %vm50_vm0 = vcmask 1043456   ;;  %v43_v0 = vld [vmem:[%s1484_s1] sm:$0xf]  ;;  %v1233_v2 = vld [vmem:[#allocation2 + $0x38] sm:$0xff] }
   0x7   :  { %v41_v1 = vld [vmem:[%s1483_s0] sm:$0xff]  ;;  %v52_v3 = vsel %vm50_vm0, %v43_v0, 0  ;;  %vm46_vm1 = vcmask 64512   ;;  %135 = vmatpush.bf16.msra.mxu1 %v1233_v2  ;;  %v1232_v5 = vld [vmem:[#allocation2 + $0x30] sm:$0xff]  ;;  %v1231_v6 = vld [vmem:[#allocation2 + $0x28] sm:$0xff]  ;;  %s1376_s16 = smov [#allocation5]  }
   0x8   :  { %v42_v4 = vpack.c.bf16 %v41_v1, %v41_v1  ;;  %61 = vmatpush.bf16.msra.mxu0 %v52_v3  ;;  %v1230_v7 = vld [vmem:[#allocation2 + $0x20] sm:$0xff]  ;;  %v1229_v8 = vld [vmem:[#allocation2 + $0x18] sm:$0xff]  ;;  %v1228_v9 = vld [vmem:[#allocation2 + $0x10] sm:$0xff]  ;;  %s893_s17 = sshll.u32 %s1376_s16, 4  ;;  %s894_s17 = int_to_ptr.vmem [resolvable:$true] %s893_s17 }
   0x9   :  { %v1227_v10 = vld [vmem:[#allocation2 + $0x8] sm:$0xff]  ;;  %v1226_v11 = vld [vmem:[#allocation2] sm:$0xff]  ;;  %v1241_v12 = vld [vmem:[#allocation2 + $0x78] sm:$0xff] }
   0xa   :  { %217 = vmatpush.bf16.msra.mxu2 %v1241_v12  ;;  %v1240_v13 = vld [vmem:[#allocation2 + $0x70] sm:$0xff]  ;;  %v1239_v14 = vld [vmem:[#allocation2 + $0x68] sm:$0xff]  ;;  %v1238_v15 = vld [vmem:[#allocation2 + $0x60] sm:$0xff] }
   0xb   :  { %905 = vmatmul.msk.bf16.vlgmr.msra.gmra.mxu0 %vm46_vm1, %v42_v4  ;;  %136 = vmatpush.bf16.msra.mxu1 %v1232_v5  ;;  %v1237_v16 = vld [vmem:[#allocation2 + $0x58] sm:$0xff]  ;;  %v1236_v17 = vld [vmem:[#allocation2 + $0x50] sm:$0xff]  ;;  %v1310_v18 = vld [vmem:[%s1487_s4] ss:$0 sm:$0xff] }
   0xc   :  { %v1235_v24 = vld [vmem:[#allocation2 + $0x48] sm:$0xff]  ;;  %v1234_v25 = vld [vmem:[#allocation2 + $0x40] sm:$0xff]  ;;  %v1249_v26 = vld [vmem:[#allocation2 + $0xb8] sm:$0xff] }
   0xd   :  { %299 = vmatpush.bf16.msra.mxu3 %v1249_v26  ;;  %v1248_v27 = vld [vmem:[#allocation2 + $0xb0] sm:$0xff]  ;;  %v1247_v28 = vld [vmem:[#allocation2 + $0xa8] sm:$0xff]  ;;  %v1246_v29 = vld [vmem:[#allocation2 + $0xa0] sm:$0xff] }
   0xe   :  { %218 = vmatpush.bf16.msra.mxu2 %v1240_v13  ;;  %v1245_v30 = vld [vmem:[#allocation2 + $0x98] sm:$0xff]  ;;  %v1244_v31 = vld [vmem:[#allocation2 + $0x90] sm:$0xff]  ;;  %v1311_v32 = vld [vmem:[%s1487_s4 + $0x1] ss:$0 sm:$0xff] }
   0xf   :  { %137 = vmatpush.bf16.msra.mxu1 %v1231_v6  ;;  %v1243_v38 = vld [vmem:[#allocation2 + $0x88] sm:$0xff]  ;;  %v1242_v39 = vld [vmem:[#allocation2 + $0x80] sm:$0xff]  ;;  %v1257_v40 = vld [vmem:[#allocation2 + $0xf8] sm:$0xff] }
  0x10   :  { %381 = vmatpush.bf16.msrb.mxu0 %v1257_v40  ;;  %v1256_v41 = vld [vmem:[#allocation2 + $0xf0] sm:$0xff]  ;;  %v1255_v42 = vld [vmem:[#allocation2 + $0xe8] sm:$0xff]  ;;  %v1254_v43 = vld [vmem:[#allocation2 + $0xe0] sm:$0xff] }
  0x11   :  { %300 = vmatpush.bf16.msra.mxu3 %v1248_v27  ;;  %v1253_v44 = vld [vmem:[#allocation2 + $0xd8] sm:$0xff]  ;;  %v1252_v45 = vld [vmem:[#allocation2 + $0xd0] sm:$0xff]  ;;  %v1312_v46 = vld [vmem:[%s1487_s4 + $0x2] ss:$0 sm:$0xff] }
  0x12   :  { %219 = vmatpush.bf16.msra.mxu2 %v1239_v14  ;;  %v1251_v52 = vld [vmem:[#allocation2 + $0xc8] sm:$0xff]  ;;  %v1250_v53 = vld [vmem:[#allocation2 + $0xc0] sm:$0xff]  ;;  %v1265_v54 = vld [vmem:[#allocation2 + $0x138] sm:$0xff] }
  0x13   :  { %138 = vmatpush.bf16.msra.mxu1 %v1230_v7  ;;  %v1264_v55 = vld [vmem:[#allocation2 + $0x130] sm:$0xff]  ;;  %v1263_v56 = vld [vmem:[#allocation2 + $0x128] sm:$0xff]  ;;  %v1262_v57 = vld [vmem:[#allocation2 + $0x120] sm:$0xff] }
  0x14   :  { %382 = vmatpush.bf16.msrb.mxu0 %v1256_v41  ;;  %v1261_v58 = vld [vmem:[#allocation2 + $0x118] sm:$0xff]  ;;  %v1260_v59 = vld [vmem:[#allocation2 + $0x110] sm:$0xff]  ;;  %v1313_v60 = vld [vmem:[%s1487_s4 + $0x3] ss:$0 sm:$0xff] }
  0x15   :  { %301 = vmatpush.bf16.msra.mxu3 %v1247_v28  ;;  %v1259_v2 = vld [vmem:[#allocation2 + $0x108] sm:$0xff]  ;;  %v1258_v3 = vld [vmem:[#allocation2 + $0x100] sm:$0xff]  ;;  %v1273_v4 = vld [vmem:[#allocation2 + $0x178] sm:$0xff] }
  0x16   :  { %220 = vmatpush.bf16.msra.mxu2 %v1238_v15  ;;  %v1272_v5 = vld [vmem:[#allocation2 + $0x170] sm:$0xff]  ;;  %v1271_v6 = vld [vmem:[#allocation2 + $0x168] sm:$0xff]  ;;  %v1270_v7 = vld [vmem:[#allocation2 + $0x160] sm:$0xff] }
  0x17   :  { %139 = vmatpush.bf16.msra.mxu1 %v1229_v8  ;;  %v1269_v8 = vld [vmem:[#allocation2 + $0x158] sm:$0xff] }
  0x18   :  { %383 = vmatpush.bf16.msrb.mxu0 %v1255_v42 }
  0x19   :  { %302 = vmatpush.bf16.msra.mxu3 %v1246_v29 }
  0x1a   :  { %221 = vmatpush.bf16.msra.mxu2 %v1237_v16  ;;  %v1267_v16 = vld [vmem:[#allocation2 + $0x148] sm:$0xff] }
  0x1b   :  { %140 = vmatpush.bf16.msra.mxu1 %v1228_v9  ;;  %v1268_v9 = vld [vmem:[#allocation2 + $0x150] sm:$0xff] }
  0x1c   :  { %384 = vmatpush.bf16.msrb.mxu0 %v1254_v43 }
  0x1d   :  { %303 = vmatpush.bf16.msra.mxu3 %v1245_v30  ;;  %v1275_v30 = vld [vmem:[#allocation2 + $0x188] sm:$0xff] }
  0x1e   :  { %222 = vmatpush.bf16.msra.mxu2 %v1236_v17  ;;  %v1266_v17 = vld [vmem:[#allocation2 + $0x140] sm:$0xff] }
  0x1f   :  { %141 = vmatpush.bf16.msra.mxu1 %v1227_v10  ;;  %v1314_v10 = vld [vmem:[%s1487_s4 + $0x4] ss:$0 sm:$0xff] }
  0x20   :  { %385 = vmatpush.bf16.msrb.mxu0 %v1253_v44  ;;  %v1283_v44 = vld [vmem:[#allocation2 + $0x1c8] sm:$0xff] }
  0x21   :  { %304 = vmatpush.bf16.msra.mxu3 %v1244_v31  ;;  %v1274_v31 = vld [vmem:[#allocation2 + $0x180] sm:$0xff] }
  0x22   :  { %223 = vmatpush.bf16.msra.mxu2 %v1235_v24  ;;  %v1315_v24 = vld [vmem:[%s1487_s4 + $0x5] ss:$0 sm:$0xff] }
  0x23   :  { %142 = vmatpush.bf16.msra.mxu1 %v1226_v11 }
  0x24   :  { %386 = vmatpush.bf16.msrb.mxu0 %v1252_v45  ;;  %v1282_v45 = vld [vmem:[#allocation2 + $0x1c0] sm:$0xff] }
  0x25   :  { %305 = vmatpush.bf16.msra.mxu3 %v1243_v38  ;;  %v1316_v38 = vld [vmem:[%s1487_s4 + $0x6] ss:$0 sm:$0xff] }
  0x26   :  { %224 = vmatpush.bf16.msra.mxu2 %v1234_v25 }
  0x27   :  { %463 = vmatpush.bf16.msrb.mxu1 %v1265_v54 }
  0x28   :  { %387 = vmatpush.bf16.msrb.mxu0 %v1251_v52  ;;  %v1317_v52 = vld [vmem:[%s1487_s4 + $0x7] ss:$0 sm:$0xff] }
  0x29   :  { %306 = vmatpush.bf16.msra.mxu3 %v1242_v39 }
  0x2a   :  { %545 = vmatpush.bf16.msrb.mxu2 %v1273_v4 }
  0x2b   :  { %464 = vmatpush.bf16.msrb.mxu1 %v1264_v55 }
  0x2c   :  { %388 = vmatpush.bf16.msrb.mxu0 %v1250_v53 }
  0x2e   :  { %546 = vmatpush.bf16.msrb.mxu2 %v1272_v5 }
  0x2f   :  { %465 = vmatpush.bf16.msrb.mxu1 %v1263_v56 }
  0x32   :  { %547 = vmatpush.bf16.msrb.mxu2 %v1271_v6 }
  0x33   :  { %466 = vmatpush.bf16.msrb.mxu1 %v1262_v57 }
  0x36   :  { %548 = vmatpush.bf16.msrb.mxu2 %v1270_v7 }
  0x37   :  { %467 = vmatpush.bf16.msrb.mxu1 %v1261_v58  ;;  %v1291_v58 = vld [vmem:[#allocation2 + $0x208] sm:$0xff] }
  0x3a   :  { %549 = vmatpush.bf16.msrb.mxu2 %v1269_v8  ;;  %v1299_v8 = vld [vmem:[%s1486_s3 + $0x8] sm:$0xff] }
  0x3b   :  { %468 = vmatpush.bf16.msrb.mxu1 %v1260_v59  ;;  %v1290_v59 = vld [vmem:[#allocation2 + $0x200] sm:$0xff] }
  0x3e   :  { %550 = vmatpush.bf16.msrb.mxu2 %v1268_v9  ;;  %v1298_v9 = vld [vmem:[%s1486_s3] sm:$0xff] }
  0x3f   :  { %469 = vmatpush.bf16.msrb.mxu1 %v1259_v2  ;;  %v1318_v2 = vld [vmem:[%s1487_s4 + $0x8] ss:$0 sm:$0xff] }
  0x42   :  { %551 = vmatpush.bf16.msrb.mxu2 %v1267_v16  ;;  %v1320_v16 = vld [vmem:[%s1488_s5] ss:$0 sm:$0xff] }
  0x43   :  { %470 = vmatpush.bf16.msrb.mxu1 %v1258_v3 }
  0x46   :  { %552 = vmatpush.bf16.msrb.mxu2 %v1266_v17 }
  0x88   :  { %v63_v19 = vpop.f32.mrf.mxu0 }
  0x89   :  { %v64_v20 = vadd.f32 %v1310_v18, %v63_v19  ;;  %v1281_v18 = vld [vmem:[#allocation2 + $0x1b8] sm:$0xff]  ;;  %v1280_v19 = vld [vmem:[#allocation2 + $0x1b0] sm:$0xff] }
  0x8a   :  { %627 = vmatpush.bf16.msrb.mxu3 %v1281_v18 }
  0x8b   :  { %v67_v21 = vmax.f32 %v64_v20, 0.0  ;;  %v1279_v20 = vld [vmem:[#allocation2 + $0x1a8] sm:$0xff] }
  0x8d   :  { %v68_v22 = vpack.c.bf16 %v67_v21, %v67_v21  ;;  %v1278_v21 = vld [vmem:[#allocation2 + $0x1a0] sm:$0xff] }
  0x8e   :  { %628 = vmatpush.bf16.msrb.mxu3 %v1280_v19 }
  0x8f   :  { %143 = vmatmul.bf16.vlgmr.msra.gmra.mxu1 %v68_v22  ;;  %v1277_v22 = vld [vmem:[#allocation2 + $0x198] sm:$0xff] }
  0x90   :  { %v65_v23 = vpop.f32.mrf.mxu0 }
  0x91   :  { %v1276_v23 = vld [vmem:[#allocation2 + $0x190] sm:$0xff] }
  0x92   :  { %629 = vmatpush.bf16.msrb.mxu3 %v1279_v20 }
  0x96   :  { %630 = vmatpush.bf16.msrb.mxu3 %v1278_v21 }
  0x9a   :  { %631 = vmatpush.bf16.msrb.mxu3 %v1277_v22 }
  0x9e   :  { %632 = vmatpush.bf16.msrb.mxu3 %v1276_v23 }
  0xa2   :  { %633 = vmatpush.bf16.msrb.mxu3 %v1275_v30 }
  0xa6   :  { %634 = vmatpush.bf16.msrb.mxu3 %v1274_v31 }
 0x10c   :  { %v144_v33 = vpop.f32.mrf.mxu1 }
 0x10d   :  { %v145_v34 = vadd.f32 %v1311_v32, %v144_v33  ;;  %v1289_v32 = vld [vmem:[#allocation2 + $0x1f8] sm:$0xff]  ;;  %v1288_v33 = vld [vmem:[#allocation2 + $0x1f0] sm:$0xff] }
 0x10e   :  { %709 = vmatpush.bf16.msra.mxu0 %v1289_v32 }
 0x10f   :  { %v148_v35 = vmax.f32 %v145_v34, 0.0  ;;  %v1287_v34 = vld [vmem:[#allocation2 + $0x1e8] sm:$0xff] }
 0x111   :  { %v149_v36 = vpack.c.bf16 %v148_v35, %v148_v35  ;;  %v1286_v35 = vld [vmem:[#allocation2 + $0x1e0] sm:$0xff] }
 0x112   :  { %710 = vmatpush.bf16.msra.mxu0 %v1288_v33 }
 0x113   :  { %225 = vmatmul.bf16.vlgmr.msra.gmra.mxu2 %v149_v36  ;;  %v1285_v36 = vld [vmem:[#allocation2 + $0x1d8] sm:$0xff] }
 0x114   :  { %v146_v37 = vpop.f32.mrf.mxu1 }
 0x115   :  { %v1284_v37 = vld [vmem:[#allocation2 + $0x1d0] sm:$0xff] }
 0x116   :  { %711 = vmatpush.bf16.msra.mxu0 %v1287_v34 }
 0x11a   :  { %712 = vmatpush.bf16.msra.mxu0 %v1286_v35 }
 0x11e   :  { %713 = vmatpush.bf16.msra.mxu0 %v1285_v36 }
 0x122   :  { %714 = vmatpush.bf16.msra.mxu0 %v1284_v37 }
 0x126   :  { %715 = vmatpush.bf16.msra.mxu0 %v1283_v44 }
 0x12a   :  { %716 = vmatpush.bf16.msra.mxu0 %v1282_v45 }
 0x196   :  { %v226_v47 = vpop.f32.mrf.mxu2 }
 0x197   :  { %v227_v48 = vadd.f32 %v1312_v46, %v226_v47  ;;  %v1297_v46 = vld [vmem:[#allocation2 + $0x238] sm:$0xff]  ;;  %v1296_v47 = vld [vmem:[#allocation2 + $0x230] sm:$0xff] }
 0x198   :  { %791 = vmatpush.bf16.msra.mxu1 %v1297_v46 }
 0x199   :  { %v230_v49 = vmax.f32 %v227_v48, 0.0  ;;  %v1295_v48 = vld [vmem:[#allocation2 + $0x228] sm:$0xff] }
 0x19b   :  { %v231_v50 = vpack.c.bf16 %v230_v49, %v230_v49  ;;  %v1294_v49 = vld [vmem:[#allocation2 + $0x220] sm:$0xff] }
 0x19c   :  { %792 = vmatpush.bf16.msra.mxu1 %v1296_v47 }
 0x19d   :  { %307 = vmatmul.bf16.vlgmr.msra.gmra.mxu3 %v231_v50  ;;  %v1293_v50 = vld [vmem:[#allocation2 + $0x218] sm:$0xff] }
 0x19e   :  { %v228_v51 = vpop.f32.mrf.mxu2 }
 0x19f   :  { %v1292_v51 = vld [vmem:[#allocation2 + $0x210] sm:$0xff] }
 0x1a0   :  { %793 = vmatpush.bf16.msra.mxu1 %v1295_v48 }
 0x1a4   :  { %794 = vmatpush.bf16.msra.mxu1 %v1294_v49 }
 0x1a8   :  { %795 = vmatpush.bf16.msra.mxu1 %v1293_v50 }
 0x1ac   :  { %796 = vmatpush.bf16.msra.mxu1 %v1292_v51 }
 0x1b0   :  { %797 = vmatpush.bf16.msra.mxu1 %v1291_v58 }
 0x1b4   :  { %798 = vmatpush.bf16.msra.mxu1 %v1290_v59 }
 0x220   :  { %v308_v61 = vpop.f32.mrf.mxu3 }
 0x221   :  { %v309_v62 = vadd.f32 %v1313_v60, %v308_v61  ;;  %v1305_v60 = vld [vmem:[%s1486_s3 + $0x38] sm:$0xff]  ;;  %v1304_v61 = vld [vmem:[%s1486_s3 + $0x30] sm:$0xff] }
 0x222   :  { %874 = vmatpush.bf16.msra.mxu2 %v1305_v60 }
 0x223   :  { %v312_v63 = vmax.f32 %v309_v62, 0.0  ;;  %v1303_v62 = vld [vmem:[%s1486_s3 + $0x28] sm:$0xff] }
 0x225   :  { %v313_v0 = vpack.c.bf16 %v312_v63, %v312_v63  ;;  %v1302_v63 = vld [vmem:[%s1486_s3 + $0x20] sm:$0xff] }
 0x226   :  { %875 = vmatpush.bf16.msra.mxu2 %v1304_v61 }
 0x227   :  { %389 = vmatmul.bf16.vlgmr.msrb.gmra.mxu0 %v313_v0  ;;  %v1301_v0 = vld [vmem:[%s1486_s3 + $0x18] sm:$0xff] }
 0x228   :  { %v310_v1 = vpop.f32.mrf.mxu3 }
 0x229   :  { %v1300_v1 = vld [vmem:[%s1486_s3 + $0x10] sm:$0xff]  ;;  %s895_s3 = sshll.u32 %s1489_s6, 4  ;;  %s896_s3 = int_to_ptr.hbm [resolvable:$true] %s895_s3 }
 0x22a   :  { %876 = vmatpush.bf16.msra.mxu2 %v1303_v62 }
 0x22e   :  { %877 = vmatpush.bf16.msra.mxu2 %v1302_v63 }
 0x232   :  { %878 = vmatpush.bf16.msra.mxu2 %v1301_v0 }
 0x236   :  { %879 = vmatpush.bf16.msra.mxu2 %v1300_v1 }
 0x23a   :  { %880 = vmatpush.bf16.msra.mxu2 %v1299_v8 }
 0x23e   :  { %881 = vmatpush.bf16.msra.mxu2 %v1298_v9 }
 0x2a4   :  { %v390_v11 = vpop.f32.mrf.mxu0 }
 0x2a5   :  { %v391_v12 = vadd.f32 %v1314_v10, %v390_v11  ;;  %v1319_v10 = vld [vmem:[%s1487_s4 + $0x9] ss:$0 sm:$0xff] }
 0x2a7   :  { %v394_v13 = vmax.f32 %v391_v12, 0.0 }
 0x2a9   :  { %v395_v14 = vpack.c.bf16 %v394_v13, %v394_v13 }
 0x2ab   :  { %471 = vmatmul.bf16.vlgmr.msrb.gmra.mxu1 %v395_v14 }
 0x2ac   :  { %v392_v15 = vpop.f32.mrf.mxu0 }
 0x328   :  { %v472_v25 = vpop.f32.mrf.mxu1 }
 0x329   :  { %v473_v26 = vadd.f32 %v1315_v24, %v472_v25 }
 0x32b   :  { %v476_v27 = vmax.f32 %v473_v26, 0.0 }
 0x32d   :  { %v477_v28 = vpack.c.bf16 %v476_v27, %v476_v27 }
 0x32f   :  { %553 = vmatmul.bf16.vlgmr.msrb.gmra.mxu2 %v477_v28 }
 0x330   :  { %v474_v29 = vpop.f32.mrf.mxu1 }
 0x3b2   :  { %v554_v39 = vpop.f32.mrf.mxu2 }
 0x3b3   :  { %v555_v40 = vadd.f32 %v1316_v38, %v554_v39 }
 0x3b5   :  { %v558_v41 = vmax.f32 %v555_v40, 0.0 }
 0x3b7   :  { %v559_v42 = vpack.c.bf16 %v558_v41, %v558_v41 }
 0x3b9   :  { %635 = vmatmul.bf16.vlgmr.msrb.gmra.mxu3 %v559_v42 }
 0x3ba   :  { %v556_v43 = vpop.f32.mrf.mxu2 }
 0x43c   :  { %v636_v53 = vpop.f32.mrf.mxu3 }
 0x43d   :  { %v637_v54 = vadd.f32 %v1317_v52, %v636_v53 }
 0x43f   :  { %v640_v55 = vmax.f32 %v637_v54, 0.0 }
 0x441   :  { %v641_v56 = vpack.c.bf16 %v640_v55, %v640_v55 }
 0x443   :  { %717 = vmatmul.bf16.vlgmr.msra.gmra.mxu0 %v641_v56 }
 0x444   :  { %v638_v57 = vpop.f32.mrf.mxu3 }
 0x4c0   :  { %v718_v3 = vpop.f32.mrf.mxu0 }
 0x4c1   :  { %v719_v4 = vadd.f32 %v1318_v2, %v718_v3 }
 0x4c3   :  { %v722_v5 = vmax.f32 %v719_v4, 0.0 }
 0x4c5   :  { %v723_v6 = vpack.c.bf16 %v722_v5, %v722_v5 }
 0x4c7   :  { %799 = vmatmul.bf16.vlgmr.msra.gmra.mxu1 %v723_v6 }
 0x4c8   :  { %v720_v7 = vpop.f32.mrf.mxu0 }
 0x544   :  { %v800_v11 = vpop.f32.mrf.mxu1 }
 0x545   :  { %v801_v12 = vadd.f32 %v1319_v10, %v800_v11 }
 0x547   :  { %v804_v13 = vmax.f32 %v801_v12, 0.0 }
 0x549   :  { %v805_v14 = vpack.c.bf16 %v804_v13, %v804_v13 }
 0x54b   :  { %882 = vmatmul.bf16.vlgmr.msra.gmra.mxu2 %v805_v14 }
 0x54c   :  { %v802_v15 = vpop.f32.mrf.mxu1 }
 0x5ce   :  { %v883_v17 = vpop.f32.mrf.mxu2 }
 0x5cf   :  { %v884_v18 = vadd.f32 %v1320_v16, %v883_v17 }
 0x5d1   :  { %887 = vst.msk [vmem:[#allocation5] sm:$0xff] %vm46_vm1, %v884_v18 }
 0x5d2   :  { %898 = dma.vmem_to_hbm [thread:$0]  %s894_s17, 128, %s896_s3, [#allocation4]  }
 0x5d6   :  { %v885_v19 = vpop.f32.mrf.mxu2 }
 0x5d7   :  { %1371 = dma.done.wait [#allocation4], 128  }
 0x5d8   :  { %1372 = vsyncadd [#allocation4], 4294967168 }
 0x5d9   :  { %903 = vsyncpa [#allocation3], 1 }
 0x5da   :  { %904 = vsyncpa [#allocation4], 1 }

</bundles_post_ra>
